<compile_context>
chip_gen: v6e
topology: v6e:2x2x1
jax: 0.10.0
libtpu: 0.0.40
codegen_flags: <defaults>
</compile_context>

<pallas_src>
import jax
import jax.numpy as jnp
import numpy as np
from jax.experimental import pallas as pl
from jax.experimental.pallas import tpu as pltpu


def _make_kernel(Nb, C_in, C_out, K, T, T_out, V, pad, dilation):
    # Temporal offset of each tap relative to the output frame index.
    offsets = [k * dilation - pad for k in range(K)]

    def kernel(x_ref, w_ref, o_ref):
        # x_ref: (Nb, C_in, T*V)        lane-dense, *unpadded* input
        # w_ref: (C_out, K*C_in + 1)    BN-folded weights, last column = shift
        # o_ref: (Nb, C_out, T_out*V)   lane-dense output
        w = w_ref[...]
        ones_row = jnp.ones((1, T_out * V), jnp.float32)   # bias/shift input row

        for n in range(Nb):                                # static unroll, Nb small
            x_n = x_ref[n]                                 # (C_in, T*V)

            # Build the im2col RHS: K shifted copies of x stacked along sublanes,
            # with the temporal halo realized as in-register zero blocks.
            rows = []
            for o in offsets:
                lo = max(0, -o)            # first output frame with valid input
                hi = min(T_out, T - o)     # one past the last valid output frame
                if hi <= lo:               # tap entirely in the halo (degenerate)
                    rows.append(jnp.zeros((C_in, T_out * V), jnp.float32))
                    continue
                pieces = []
                if lo > 0:
                    pieces.append(jnp.zeros((C_in, lo * V), jnp.float32))
                pieces.append(x_n[:, (lo + o) * V:(hi + o) * V])
                if hi < T_out:
                    pieces.append(jnp.zeros((C_in, (T_out - hi) * V), jnp.float32))
                rows.append(pieces[0] if len(pieces) == 1
                            else jnp.concatenate(pieces, axis=1))

            rhs = jnp.concatenate(rows + [ones_row], axis=0)   # (K*C_in+1, T_out*V)

            # Single MXU push: conv + bias + BatchNorm (folded) in one matmul.
            y = jnp.dot(w, rhs, preferred_element_type=jnp.float32)
            o_ref[n] = y.astype(o_ref.dtype)

    return kernel


def temporal_conv_forward(x, conv_w, conv_b, bn_gamma, bn_beta, bn_mean, bn_var,
                          *, stride=1, dilation=1, eps=1e-5, batch_block=1):
    """x: (N, C_in, T, V) f32; conv_w: (C_out, C_in, K); conv_b/bn_*: (C_out,).
       Returns BatchNorm(Conv2d(x)) of shape (N, C_out, T_out, V)."""
    assert stride == 1  # TODO(synk): stride>1 not implemented (module default is 1)
    N, C_in, T, V = x.shape
    C_out, C_in_w, K = conv_w.shape
    assert C_in_w == C_in
    pad = (K + (K - 1) * (dilation - 1) - 1) // 2
    T_out = T + 2 * pad - dilation * (K - 1)
    assert N % batch_block == 0

    # Fold inference-mode BN into the conv: y = scale*(Wx + b - mean) + beta.
    scale = (bn_gamma / jnp.sqrt(bn_var + eps)).astype(jnp.float32)          # (C_out,)
    shift = (bn_beta + scale * (conv_b - bn_mean)).astype(jnp.float32)       # (C_out,)

    # 2-D im2col weight: w2d[co, k*C_in + ci] = conv_w[co, ci, k], pre-scaled,
    # with the per-channel shift appended as the last column (ones-row trick).
    w2d = jnp.transpose(conv_w.astype(jnp.float32), (0, 2, 1)).reshape(C_out, K * C_in)
    w_aug = jnp.concatenate([scale[:, None] * w2d, shift[:, None]], axis=1)  # (C_out, K*C_in+1)

    # Lane-dense input: flatten (T, V) -> T*V (contiguous reshape, no extra copy).
    x_flat = x.astype(jnp.float32).reshape(N, C_in, T * V)

    kernel = _make_kernel(batch_block, C_in, C_out, K, T, T_out, V, pad, dilation)
    out = pl.pallas_call(
        kernel,
        out_shape=jax.ShapeDtypeStruct((N, C_out, T_out * V), jnp.float32),
        grid=(N // batch_block,),
        in_specs=[
            pl.BlockSpec((batch_block, C_in, T * V), lambda i: (i, 0, 0)),
            pl.BlockSpec((C_out, K * C_in + 1), lambda i: (0, 0)),
        ],
        out_specs=pl.BlockSpec((batch_block, C_out, T_out * V), lambda i: (i, 0, 0)),
        compiler_params=pltpu.CompilerParams(dimension_semantics=("parallel",)),
    )(x_flat, w_aug)
    return out.reshape(N, C_out, T_out, V)


def temporal_conv_reference(x, conv_w, conv_b, bn_gamma, bn_beta, bn_mean, bn_var,
                            *, stride=1, dilation=1, eps=1e-5):
    """Pure-JAX reference mirroring the PyTorch forward (BN in eval mode)."""
    C_out, C_in, K = conv_w.shape
    pad = (K + (K - 1) * (dilation - 1) - 1) // 2
    y = jax.lax.conv_general_dilated(
        x.astype(jnp.float32), conv_w[..., None].astype(jnp.float32),
        window_strides=(stride, 1), padding=((pad, pad), (0, 0)),
        rhs_dilation=(dilation, 1),
        dimension_numbers=("NCHW", "OIHW", "NCHW"))
    y = y + conv_b[None, :, None, None]
    scale = bn_gamma / jnp.sqrt(bn_var + eps)
    return (scale[None, :, None, None] * (y - bn_mean[None, :, None, None])
            + bn_beta[None, :, None, None])


if __name__ == "__main__":
    # Small shapes consistent with the module: (N, C_in, T, V), kernel_size K.
    N, C_in, C_out, T, V, K = 2, 4, 8, 16, 16, 5

    key = jax.random.PRNGKey(0)
    k_x, k_w, k_b, k_g, k_be, k_m, k_v = jax.random.split(key, 7)

    x = jax.random.normal(k_x, (N, C_in, T, V), jnp.float32)
    conv_w = jax.random.normal(k_w, (C_out, C_in, K), jnp.float32) * 0.3
    conv_b = jax.random.normal(k_b, (C_out,), jnp.float32) * 0.1
    bn_gamma = jax.random.uniform(k_g, (C_out,), jnp.float32, 0.5, 1.5)
    bn_beta = jax.random.normal(k_be, (C_out,), jnp.float32) * 0.1
    bn_mean = jax.random.normal(k_m, (C_out,), jnp.float32) * 0.1
    bn_var = jax.random.uniform(k_v, (C_out,), jnp.float32, 0.5, 2.0)

    ok = True
    for dil in (1, 2):   # default config plus a dilated variant
        out = temporal_conv_forward(x, conv_w, conv_b, bn_gamma, bn_beta,
                                    bn_mean, bn_var, dilation=dil)
        out = jax.block_until_ready(out)
        ref = temporal_conv_reference(x, conv_w, conv_b, bn_gamma, bn_beta,
                                      bn_mean, bn_var, dilation=dil)
        np.testing.assert_allclose(np.asarray(out), np.asarray(ref),
                                   rtol=1e-4, atol=1e-4)

    if ok:
        print("KERNEL_OK")
</pallas_src>

<mosaic_0001>
module attributes {stable_mosaic.version = 11 : i64} {
  func.func @kernel(%arg0: i32, %arg1: memref<1x4x256xf32, #tpu.memory_space<vmem>>, %arg2: memref<8x21xf32, #tpu.memory_space<vmem>>, %arg3: memref<1x8x256xf32, #tpu.memory_space<vmem>>) attributes {dimension_semantics = [#tpu.dimension_semantics<parallel>], iteration_bounds = array<i64: 2>, scalar_prefetch = 0 : i64, scratch_operands = 0 : i64, tpu.core_type = #tpu.core_type<tc>, window_params = [{transform_indices = @transform_0, window_bounds = array<i64: 1, 4, 256>}, {pipeline_mode = #tpu.pipeline_mode<synchronous>, transform_indices = @transform_1, window_bounds = array<i64: 8, 21>}, {transform_indices = @transform_2, window_bounds = array<i64: 1, 8, 256>}]} {
    %c0 = arith.constant 0 : index
    %c0_0 = arith.constant 0 : index
    %0 = vector.load %arg2[%c0, %c0_0] : memref<8x21xf32, #tpu.memory_space<vmem>>, vector<8x21xf32>
    %cst = arith.constant 1.000000e+00 : f32
    %1 = vector.broadcast %cst : f32 to vector<1x256xf32>
    %c0_1 = arith.constant 0 : index
    %c0_2 = arith.constant 0 : index
    %c0_3 = arith.constant 0 : index
    %2 = vector.load %arg1[%c0_1, %c0_2, %c0_3] : memref<1x4x256xf32, #tpu.memory_space<vmem>>, vector<1x4x256xf32>
    %3 = vector.shape_cast %2 : vector<1x4x256xf32> to vector<4x256xf32>
    %cst_4 = arith.constant 0.000000e+00 : f32
    %4 = vector.broadcast %cst_4 : f32 to vector<4x32xf32>
    %5 = vector.extract_strided_slice %3 {offsets = [0, 0], sizes = [4, 224], strides = [1, 1]} : vector<4x256xf32> to vector<4x224xf32>
    %6 = tpu.concatenate %4, %5 in 1 : vector<4x32xf32>, vector<4x224xf32> -> vector<4x256xf32>
    %cst_5 = arith.constant 0.000000e+00 : f32
    %7 = vector.broadcast %cst_5 : f32 to vector<4x16xf32>
    %8 = vector.extract_strided_slice %3 {offsets = [0, 0], sizes = [4, 240], strides = [1, 1]} : vector<4x256xf32> to vector<4x240xf32>
    %9 = tpu.concatenate %7, %8 in 1 : vector<4x16xf32>, vector<4x240xf32> -> vector<4x256xf32>
    %10 = vector.extract_strided_slice %3 {offsets = [0, 16], sizes = [4, 240], strides = [1, 1]} : vector<4x256xf32> to vector<4x240xf32>
    %cst_6 = arith.constant 0.000000e+00 : f32
    %11 = vector.broadcast %cst_6 : f32 to vector<4x16xf32>
    %12 = tpu.concatenate %10, %11 in 1 : vector<4x240xf32>, vector<4x16xf32> -> vector<4x256xf32>
    %13 = vector.extract_strided_slice %3 {offsets = [0, 32], sizes = [4, 224], strides = [1, 1]} : vector<4x256xf32> to vector<4x224xf32>
    %cst_7 = arith.constant 0.000000e+00 : f32
    %14 = vector.broadcast %cst_7 : f32 to vector<4x32xf32>
    %15 = tpu.concatenate %13, %14 in 1 : vector<4x224xf32>, vector<4x32xf32> -> vector<4x256xf32>
    %16 = tpu.concatenate %6, %9, %3, %12, %15, %1 in 0 : vector<4x256xf32>, vector<4x256xf32>, vector<4x256xf32>, vector<4x256xf32>, vector<4x256xf32>, vector<1x256xf32> -> vector<21x256xf32>
    %cst_8 = arith.constant dense<0.000000e+00> : vector<8x256xf32>
    %17 = tpu.matmul %0, %16, %cst_8 {dimension_numbers = #tpu.dot_dimension_numbers<[1], [0], [0], [1], [0, 0, 1, 1], [], []>} : vector<8x21xf32>, vector<21x256xf32>, vector<8x256xf32> -> vector<8x256xf32>
    %c0_9 = arith.constant 0 : index
    %c0_10 = arith.constant 0 : index
    %c0_11 = arith.constant 0 : index
    %18 = vector.load %arg3[%c0_9, %c0_10, %c0_11] : memref<1x8x256xf32, #tpu.memory_space<vmem>>, vector<1x8x256xf32>
    %19 = vector.shape_cast %18 : vector<1x8x256xf32> to vector<8x256xf32>
    %20 = vector.shape_cast %17 : vector<8x256xf32> to vector<1x8x256xf32>
    tpu.vector_store %arg3[%c0_9, %c0_10, %c0_11], %20 {strides = array<i32>} : memref<1x8x256xf32, #tpu.memory_space<vmem>>, vector<1x8x256xf32>,
    return
  }
  func.func @transform_0(%arg0: i32) -> (i32, i32, i32) {
    %c0_i32 = arith.constant 0 : i32
    %c0_i32_0 = arith.constant 0 : i32
    %c0_i32_1 = arith.constant 0 : i32
    return %arg0, %c0_i32, %c0_i32_0 : i32, i32, i32
  }
  func.func @transform_1(%arg0: i32) -> (i32, i32) {
    %c0_i32 = arith.constant 0 : i32
    %c0_i32_0 = arith.constant 0 : i32
    %c0_i32_1 = arith.constant 0 : i32
    return %c0_i32, %c0_i32_0 : i32, i32
  }
  func.func @transform_2(%arg0: i32) -> (i32, i32, i32) {
    %c0_i32 = arith.constant 0 : i32
    %c0_i32_0 = arith.constant 0 : i32
    %c0_i32_1 = arith.constant 0 : i32
    return %arg0, %c0_i32, %c0_i32_0 : i32, i32, i32
  }
}

</mosaic_0001>

<bundles_post_ra>
// kernel: tpu_custom_call.1
= control target key start
LH: loop header
LB: loop body
LE: loop exit
PB: predicated region body
PF: predicated region fallthrough
CT: control target
= control target key end

     0   :  { %7 = vsyncpa [#allocation3], 0  ;;  %s818_s0 = inlined_call_operand.hbm [shape: f32[2,4,256], index: 0, kind: input, shape index: {}]   ;;  %s819_s1 = inlined_call_operand.hbm [shape: f32[8,21], index: 1, kind: input, shape index: {}]   ;;  %s820_s2 = inlined_call_operand.hbm [shape: f32[2,8,256], index: 2, kind: output, shape index: {}]  }
   0x1   :  { %9 = vsyncpa [#allocation3 + $0x1], 0 }
   0x2   :  { %10 = vsyncpa [#allocation6], 0 }
   0x3   :  { %11 = vsyncpa [#allocation4], 0 }
   0x4   :  { %13 = vsyncpa [#allocation4 + $0x1], 0  ;;  %s639_s9 = smov 0   ;;  %s641_s10 = smov 0  }
   0x5   :  { %s643_s11 = smov 0   ;;  %s645_s12 = smov 0  }
   0x6 LB: > { %s660_s13 = sadd.s32 4294967295, %s614_s12   ;;  %s408_s14 = sadd.s32 4294967294, %s614_s12   ;;  %s614_s12 = sphi %s645_s12, %s843_s12   ;;  %s610_s11 = sphi %s643_s11, %s842_s11   ;;  %s606_s10 = sphi %s641_s10, %s841_s10   ;;  %s602_s9 = sphi %s639_s9, %s840_s9  }
   0x7   : > { %p39_p0 = scmp.ne.s32.totalorder %s606_s10, %s602_s9  ;;  %p821_p1 = scmp.eq.s32.totalorder %s660_s13, 0 }
   0x8   : > { %p90_p3 = scmp.eq.s32.totalorder %s408_s14, 1  ;;  %p409_p5 = scmp.ge.s32.totalorder %s614_s12, 1 }
   0x9   : > { %p669_p4 = por %p821_p1, %p39_p0  ;;  %p97_p7 = scmp.lt.s32.totalorder %s614_s12, 3 }
   0xa   : > { %p674_p6 = por %p90_p3, %p39_p0  ;;  %s616_s18 = smov [#allocation5]  }
   0xb   : > { %s825_s15 = scalar_select %p669_p4, 1, 0 }
   0xc   : > { %s826_s16 = scalar_select %p674_p6, 1, 0 }
   0xd   : > { %p679_p8 = pnand %p409_p5, %p97_p7  ;;  %s110_s19 = sshll.u32 %s616_s18, 4  ;;  %s111_s19 = int_to_ptr.vmem [resolvable:$true] %s110_s19 }
   0xe   : > { %s687_s20 = sadd.s32 1, %s614_s12   ;;  %s26_s24 = sadd.s32 1, %s610_s11 }
   0xf   : > { %s827_s17 = scalar_select %p679_p8, 1, 0 }
  0x10   : > { %p437_p10 = pneg %p679_p8  ;;  %s23_s22 = ssub.s32 %s614_s12, %s687_s20 }
  0x11   : > { %p697_p12 = scmp.eq.s32.totalorder %s23_s22, 0  ;;  %p33_p13 = scmp.ne.s32.totalorder %s610_s11, %s606_s10 }
  0x12   : > { %p691_p11 = pnand %p437_p10, %p821_p1  ;;  %s503_s25 = scalar_lea.vmem %s111_s19, 128 }
  0x13   : > { %p504_p3 = scmp.ne.s32.totalorder %s111_s19, %s503_s25  ;;  %p511_p9 = scmp.lt.s32.totalorder %s111_s19, %s111_s19 }
  0x14   : > { %p494_p0 = pneg %p691_p11  ;;  %p512_p2 = scmp.lt.s32.totalorder %s503_s25, %s503_s25 }
  0x16   : > { %p506_p5 = pnand %p504_p3, %p494_p0  ;;  %p513_p10 = por %p512_p2, %p511_p9 }
  0x18   : > { %p507_p7 = pneg %p506_p5 }
  0x1a   : > { %p514_p1 = pnand %p513_p10, %p507_p7 }
  0x1c   : > { %517 = shalt.err (!%p514_p1)
}
  0x1d   : > { %440 = dma.hbm_to_vmem [thread:$0]  (!%p691_p11), %s819_s1, 128, %s111_s19, [#allocation6]  }
  0x1e   : > { %s714_s28 = scalar_select %p697_p12, %s610_s11, %s26_s24  }
  0x1f   : > { %p34_p1 = scmp.eq.s32.totalorder %s614_s12, 0  ;;  %p830_p2 = scmp.eq.s32.totalorder %s660_s13, 1 }
  0x20   : > { %p450_p0 = scmp.lt.s32.totalorder %s614_s12, 2  ;;  %s121_s30 = sand.u32 1, %s610_s11  }
  0x21   : > { %p722_p9 = por %p830_p2, %p33_p13  ;;  %p35_p3 = por %p34_p1, %p33_p13 }
  0x22   : > { %s412_s3 = sshll.u32 %s121_s30, 3  ;;  %s427_s4 = sshll.u32 %s614_s12, 7 }
  0x23   : > { %s831_s29 = scalar_select %p722_p9, 1, 0 }
  0x24   : > { %s735_s7 = scalar_lea.hbm %s818_s0, %s427_s4  ;;  %s125_s8 = scalar_lea.vmem [#allocation2], %s412_s3 }
  0x25   : > { %s133_s14 = sshll.u32 %s125_s8, 4  ;;  %p737_p11 = pnand %p450_p0, %p35_p3  ;;  %s134_s14 = int_to_ptr.vmem [resolvable:$true] %s133_s14 }
  0x26   : > { %s122_s19 = scalar_lea.sflag [#allocation3], %s121_s30  ;;  %s518_s21 = scalar_lea.hbm %s735_s7, 128 }
  0x27   : > { %p519_p12 = scmp.ne.s32.totalorder %s735_s7, %s518_s21  ;;  %p520_p13 = pneg %p737_p11 }
  0x28   : > { %s523_s24 = scalar_lea.hbm %s818_s0, 256  ;;  %p524_p10 = scmp.lt.s32.totalorder %s735_s7, %s818_s0 }
  0x29   : > { %p521_p5 = pnand %p520_p13, %p519_p12  ;;  %p525_p1 = scmp.lt.s32.totalorder %s523_s24, %s518_s21 }
  0x2b   : > { %p522_p7 = pneg %p521_p5  ;;  %p526_p2 = por %p525_p1, %p524_p10 }
  0x2d   : > { %p527_p0 = pnand %p526_p2, %p522_p7 }
  0x2f   : > { %530 = shalt.err (!%p527_p0)
}
  0x30   : > { %s531_s27 = scalar_lea.vmem %s134_s14, 128  ;;  %s617_s30 = smov [#allocation2]  }
  0x31   : > { %p532_p3 = scmp.ne.s32.totalorder %s134_s14, %s531_s27  ;;  %s536_s3 = sshll.u32 %s617_s30, 4  ;;  %s537_s3 = int_to_ptr.vmem [resolvable:$false] %s536_s3 }
  0x32   : > { %s538_s4 = scalar_lea.vmem %s537_s3, 256  ;;  %p539_p12 = scmp.lt.s32.totalorder %s134_s14, %s537_s3 }
  0x33   : > { %p534_p6 = pnand %p532_p3, %p520_p13  ;;  %p540_p5 = scmp.lt.s32.totalorder %s538_s4, %s531_s27 }
  0x35   : > { %p535_p9 = pneg %p534_p6  ;;  %p541_p4 = por %p540_p5, %p539_p12 }
  0x37   : > { %p542_p8 = pnand %p541_p4, %p535_p9 }
  0x39   : > { %545 = shalt.err (!%p542_p8)
}
  0x3a   : > { %444 = dma.hbm_to_vmem [thread:$0]  (!%p737_p11), %s735_s7, 128, %s134_s14, %s122_s19  }
  0x3b   : > { %p833_p7 = scmp.ne.s32.totalorder %s827_s17, 0 }
  0x3c   : > { %s758_s5 = sand.u32 (!%p833_p7), 1, %s606_s10   ;;  %p834_p6 = scmp.ne.s32.totalorder (!%p833_p7), %s825_s15, 0 }
  0x3d   : > { %142 = sbr.rel (%p833_p7) target bundleno = 410 (0x19a), region = 28  ;;  %s416_s6 = sshll.u32 (!%p833_p7), %s758_s5, 3 }
  0x3e   : > { %s145_s8 = scalar_lea.sflag (!%p833_p7), [#allocation3], %s758_s5  ;;  %s148_s21 = scalar_lea.vmem (!%p833_p7), [#allocation2], %s416_s6 }
  0x42   : > { %589 = dma.done.wait (%p834_p6), %s145_s8, 128  }
  0x43   : > { %591 = vsyncadd (%p834_p6), %s145_s8, 4294967168  ;;  %p835_p4 = scmp.eq.s32.totalorder %s660_s13, 0 }
  0x45   : > { %593 = dma.done.wait (%p835_p4), [#allocation6], 128   ;;  %p836_p8 = pmov %p835_p4 }
  0x46   : > { %v174_v0 = vld [vmem:[%s148_s21] sm:$0xff]  ;;  %s618_s17 = smov 16   ;;  %s619_s7 = smov 112   ;;  %v620_v2 = vmov 0.0   ;;  %vm198_vm0 = vcmask 916480   ;;  %vm190_vm1 = vcmask 130048  }
  0x47   : > { %595 = vsyncadd (%p836_p8), [#allocation6], 4294967168  ;;  %186 = vrot.lane.b32.xlu0 %v174_v0, %s618_s17  ;;  %194 = vrot.lane.b32.xlu1 %v174_v0, %s619_s7  ;;  %v176_v1 = vcombine.high %v174_v0, %v174_v0  ;;  %s621_s14 = smov 96   ;;  %s622_s15 = smov 32   ;;  %vm206_vm2 = vcmask 785408   ;;  %vm222_vm3 = vcmask 1043456  }
  0x48   : > { %304 = vmatprep.mubr.f32.mxu0 %v620_v2  ;;  %vm233_vm4 = vcmask 1044480   ;;  %vm181_vm5 = vcmask 261120   ;;  %v173_v29 = vld [vmem:[#allocation5] sm:$0xff]  ;;  %vm229_vm6 = vcmask 171008   ;;  %s418_s18 = sshll.u32 %s758_s5, 4  ;;  %s428_s23 = sshll.u32 %s660_s13, 8 }
  0x49   : > { %s172_s19 = scalar_lea.vmem [#allocation7], %s418_s18  ;;  %s326_s26 = scalar_lea.hbm %s820_s2, %s428_s23 }
  0x4a   : > { %s328_s22 = sshll.u32 %s172_s19, 4  ;;  %s314_s27 = scalar_lea.sflag [#allocation4], %s758_s5  ;;  %s778_s22 = int_to_ptr.vmem [resolvable:$true] %s328_s22 }
  0x4b   : > { %202 = vrot.lane.b32.xlu1 %v174_v0, %s621_s14  ;;  %196 = vrot.lane.b32.xlu0 %v176_v1, %s619_s7  ;;  %s546_s30 = scalar_lea.vmem %s778_s22, 256  ;;  %p837_p11 = scmp.ne.s32.totalorder %s831_s29, 0 }
  0x4c   : > { %p547_p9 = scmp.ne.s32.totalorder %s778_s22, %s546_s30  ;;  %s623_s13 = smov [#allocation7]  }
  0x4d   : > { %s550_s3 = sshll.u32 %s623_s13, 4  ;;  %s551_s3 = int_to_ptr.vmem [resolvable:$false] %s550_s3 }
  0x4e   : > { %p548_p13 = pnand %p547_p9, %p837_p11  ;;  %s552_s4 = scalar_lea.vmem %s551_s3, 512 }
  0x4f   : > { %188 = vrot.lane.b32.xlu1 %v176_v1, %s618_s17  ;;  %204 = vrot.lane.b32.xlu0 %v176_v1, %s621_s14  ;;  %p553_p1 = scmp.lt.s32.totalorder %s778_s22, %s551_s3  ;;  %p554_p2 = scmp.lt.s32.totalorder %s552_s4, %s546_s30 }
  0x50   : > { %p549_p10 = pneg %p548_p13 }
  0x51   : > { %p555_p0 = por %p554_p2, %p553_p1 }
  0x53   : > { %179 = vrot.lane.b32.xlu1 %v176_v1, %s622_s15  ;;  %177 = vrot.lane.b32.xlu0 %v174_v0, %s622_s15  ;;  %p556_p3 = pnand %p555_p0, %p549_p10 }
  0xb9   : > { %v187_v3 = vpop.permute.xlu0 %186  ;;  %v195_v4 = vpop.permute.xlu1 %194 }
  0xba   : > { %v193_v9 = vsel %vm190_vm1, 0.0, %v187_v3 }
  0xbb   : > { %v212_v19 = vrot.slane %v193_v9, 4 }
  0xbd   : > { %v203_v5 = vpop.permute.xlu1 %202  ;;  %v197_v6 = vpop.permute.xlu0 %196 }
  0xbe   : > { %v201_v7 = vsel %vm198_vm0, %v197_v6, 0.0  ;;  %v199_v8 = vsel %vm198_vm0, %v195_v4, %v197_v6 }
  0xbf   : > { %v219_v10 = vrot.slane %v201_v7, 4  ;;  %v218_v13 = vrot.slane %v199_v8, 4 }
  0xc1   : > { %v189_v11 = vpop.permute.xlu1 %188  ;;  %v205_v12 = vpop.permute.xlu0 %204  ;;  %v226_v23 = vsel %vm222_vm3, %v176_v1, %v219_v10  ;;  %v225_v26 = vsel %vm222_vm3, %v174_v0, %v218_v13 }
  0xc2   : > { %v191_v14 = vsel %vm190_vm1, %v187_v3, %v189_v11  ;;  %v207_v15 = vsel %vm206_vm2, %v203_v5, %v205_v12  ;;  %v210_v16 = vsel %vm206_vm2, %v205_v12, 0.0 }
  0xc3   : > { %v228_v17 = vsel %vm222_vm3, %v210_v16, 1.0  ;;  %v227_v18 = vsel %vm222_vm3, %v207_v15, 1.0  ;;  %v213_v20 = vrot.slane %v191_v14, 4 }
  0xc4   : > { %419 = vmatprep.subr.msk.mxu0 %vm233_vm4, %v228_v17 }
  0xc5   : > { %v180_v21 = vpop.permute.xlu1 %179  ;;  %420 = vmatpush1.msk.msra.mxu0 %vm233_vm4, %v227_v18  ;;  %v178_v22 = vpop.permute.xlu0 %177 }
  0xc6   : > { %v182_v24 = vsel %vm181_vm5, %v178_v22, %v180_v21  ;;  %v185_v25 = vsel %vm181_vm5, 0.0, %v178_v22  ;;  %268 = vmatprep.subr.mxu0 %v226_v23 }
  0xc7   : > { %269 = vmatpush1.msra.mxu0 %v225_v26  ;;  %v224_v27 = vsel %vm222_vm3, %v182_v24, %v213_v20  ;;  %v223_v28 = vsel %vm222_vm3, %v185_v25, %v212_v19 }
  0xc8   : > { %270 = vmatprep.subr.mxu0 %v224_v27 }
  0xc9   : > { %271 = vmatpush1.msra.mxu0 %v223_v28 }
  0xca   : > { %421 = vmatmul.mubr.msk.f32.vlgmr.msra.gmra.mxu0 %vm229_vm6, %v173_v29 }
 0x18a   : > { %v306_v30 = vpop.f32.mrf.mxu0 }
 0x18b   : > { %311 = vst [vmem:[%s172_s19] sm:$0xff] %v306_v30 }
 0x18c   : > { %v308_v31 = vpop.f32.mrf.mxu0 }
 0x18d   : > { %312 = vst [vmem:[%s172_s19 + $0x8] sm:$0xff] %v308_v31 }
 0x18e   : > { %559 = shalt.err (!%p556_p3)
}
 0x18f   : > { %s560_s6 = scalar_lea.hbm %s326_s26, 256  ;;  %s564_s21 = scalar_lea.hbm %s820_s2, 512 }
 0x190   : > { %p561_p12 = scmp.ne.s32.totalorder %s326_s26, %s560_s6  ;;  %p565_p6 = scmp.lt.s32.totalorder %s326_s26, %s820_s2 }
 0x191   : > { %p566_p4 = scmp.lt.s32.totalorder %s564_s21, %s560_s6 }
 0x192   : > { %p562_p5 = pnand %p561_p12, %p837_p11 }
 0x193   : > { %p567_p8 = por %p566_p4, %p565_p6 }
 0x194   : > { %p563_p7 = pneg %p562_p5 }
 0x196   : > { %p568_p9 = pnand %p567_p8, %p563_p7 }
 0x198   : > { %571 = shalt.err (!%p568_p9)
}
 0x199   : > { %435 = dma.vmem_to_hbm [thread:$0]  (%p837_p11), %s778_s22, 256, %s326_s26, %s314_s27  }
 0x19a PF: > { %s340_s14 = sand.u32 1, %s602_s9   ;;  %p838_p13 = scmp.ne.s32.totalorder %s826_s16, 0 }
 0x19b   : > { %p839_p10 = scmp.ge.s32.totalorder %s614_s12, 2  ;;  %s341_s15 = scalar_lea.sflag [#allocation4], %s340_s14 }
 0x19d   : > { %p446_p1 = pnand %p839_p10, %p838_p13 }
 0x19f   : > { %p447_p2 = pneg %p446_p1 }
 0x1a1   : > { %597 = dma.done.wait (%p447_p2), %s341_s15, 256  }
 0x1a2   : > { %599 = vsyncadd (%p447_p2), %s341_s15, 4294967040  ;;  %p16_p0 = scmp.ge.s32.totalorder %s687_s20, 4   ;;  %s840_s9 = smov %s606_s10 }
 0x1a3   : > { %s841_s10 = smov %s610_s11  ;;  %s842_s11 = smov %s714_s28 }
 0x1a4   : > { %s843_s12 = smov %s687_s20  ;;  %18 = sbr.rel (!%p16_p0) target bundleno = 6 (0x6), region = 77 }
 0x1a9   :  { %346 = vsyncpa [#allocation3], 1 }
 0x1aa   :  { %348 = vsyncpa [#allocation3 + $0x1], 1 }
 0x1ab   :  { %349 = vsyncpa [#allocation6], 1 }
 0x1ac   :  { %350 = vsyncpa [#allocation4], 1 }
 0x1ad   :  { %352 = vsyncpa [#allocation4 + $0x1], 1 }

</bundles_post_ra>
